<compile_context>
chip_gen: v6e
topology: v6e:2x2x1
jax: 0.10.0
libtpu: 0.0.40
codegen_flags: <defaults>
</compile_context>

<pallas_src>
import functools
import math

import jax
import jax.numpy as jnp
from jax import lax
from jax.experimental import pallas as pl
from jax.experimental.pallas import tpu as pltpu


def _gabor_kernel(x_ref, c_ref, o_ref, *, K, O, F):
    # x_ref: (tm, F*K)   folded input rows (F original rows per folded row)
    # c_ref: (2K+3, F*O) per-lane constants (tiled F times along lanes):
    #        rows [0, K)   : W[:, k]
    #        rows [K, 2K)  : gamma * mu[:, k]
    #        row  2K       : bias
    #        row  2K+1     : -0.5 * gamma * ||mu||^2
    #        row  2K+2     : -0.5 * gamma
    # o_ref: (tm, F*O)   folded output
    tm = x_ref.shape[0]
    FO = F * O
    x = x_ref[...]

    # Per-segment lane spread: xb[k][:, f*O + o] = x[:, f*K + k]  for all o.
    if F > 1:
        lane = lax.broadcasted_iota(jnp.int32, (tm, FO), 1)
        seg_masks = [lane < (f + 1) * O for f in range(F - 1)]

    def spread(k):
        out = jnp.broadcast_to(x[:, (F - 1) * K + k:(F - 1) * K + k + 1], (tm, FO))
        for f in range(F - 2, -1, -1):
            col = jnp.broadcast_to(x[:, f * K + k:f * K + k + 1], (tm, FO))
            out = jnp.where(seg_masks[f], col, out)
        return out

    xb = [spread(k) for k in range(K)]

    # z = x @ W.T + b  -- exact f32 broadcast-FMAs on the VPU (no MXU passes).
    z = c_ref[2 * K:2 * K + 1, :] + xb[0] * c_ref[0:1, :]
    for k in range(1, K):
        z = z + xb[k] * c_ref[k:k + 1, :]

    # exponent = -0.5*gamma*D
    #          = (-0.5*gamma)*||x||^2 + gamma*(x . mu) + (-0.5*gamma*||mu||^2)
    xsq = xb[0] * xb[0]
    for k in range(1, K):
        xsq = xsq + xb[k] * xb[k]
    e = c_ref[2 * K + 1:2 * K + 2, :] + xsq * c_ref[2 * K + 2:2 * K + 3, :]
    for k in range(K):
        e = e + xb[k] * c_ref[K + k:K + k + 1, :]

    # 2 transcendentals per output element (EUP); multiplies ride VALU slots.
    o_ref[...] = (jnp.sin(z) * jnp.exp(e)).astype(o_ref.dtype)


def _round_up(n, m):
    return ((n + m - 1) // m) * m


def gabor_layer(x, weight, bias, mu, gamma, *, row_tile=1024):
    """x: (..., K); weight/mu: (O, K); bias/gamma: (O,). Returns (..., O)."""
    *lead, k = x.shape
    o, k_w = weight.shape
    assert k == k_w and mu.shape == (o, k)
    assert bias.shape == (o,) and gamma.shape == (o,)

    m = int(math.prod(lead)) if lead else 1
    x2d = x.reshape(m, k).astype(jnp.float32)

    # Lane densification: fold F consecutive rows into the 128-lane axis when
    # O < 128 so every vreg / EUP push / store is 128 lanes wide.
    f_fold = 128 // o if (o < 128 and 128 % o == 0) else 1
    m_pad = _round_up(m, f_fold)
    if m_pad != m:                      # < F extra rows, only when M % F != 0
        x2d = jnp.pad(x2d, ((0, m_pad - m), (0, 0)))
    m_f = m_pad // f_fold
    fk, fo = f_fold * k, f_fold * o
    x_fold = x2d.reshape(m_f, fk)       # free (row-major contiguous)

    # Fold -0.5, gamma and ||mu||^2 into a tiny per-lane constant table.
    w32 = weight.astype(jnp.float32)
    mu32 = mu.astype(jnp.float32)
    gam = gamma.astype(jnp.float32)
    gmu = gam[:, None] * mu32                                    # (O, K)
    rows = ([w32[:, j] for j in range(k)]
            + [gmu[:, j] for j in range(k)]
            + [bias.astype(jnp.float32),
               -0.5 * gam * jnp.sum(mu32 * mu32, axis=-1),
               -0.5 * gam])
    consts = jnp.tile(jnp.stack(rows, axis=0), (1, f_fold))      # (2K+3, F*O)

    # Large row tile (amortize ~0.35us/grid step) but always >= 2 grid steps
    # so v7x's two TensorCores both get work; Pallas clips the ragged last
    # block (no wrapper-side pad of x to a tile multiple).
    tm = min(row_tile, max(8, _round_up(pl.cdiv(m_f, 2), 8)))
    grid = (pl.cdiv(m_f, tm),)

    kernel = functools.partial(_gabor_kernel, K=k, O=o, F=f_fold)
    out_fold = pl.pallas_call(
        kernel,
        out_shape=jax.ShapeDtypeStruct((m_f, fo), x.dtype),
        grid_spec=pltpu.PrefetchScalarGridSpec(
            num_scalar_prefetch=0,
            grid=grid,
            in_specs=[
                pl.BlockSpec((tm, fk), lambda i: (i, 0)),          # folded x rows
                pl.BlockSpec((2 * k + 3, fo), lambda i: (0, 0)),   # resident consts
            ],
            out_specs=pl.BlockSpec((tm, fo), lambda i: (i, 0)),
        ),
        compiler_params=pltpu.CompilerParams(
            dimension_semantics=("parallel",),
        ),
    )(x_fold, consts)

    out2d = out_fold.reshape(m_pad, o)
    if m_pad != m:
        out2d = out2d[:m]
    return out2d.reshape(*lead, o)


def _reference(x, weight, bias, mu, gamma):
    z = jnp.einsum("...k,ok->...o", x, weight, precision="highest") + bias
    d = (
        jnp.sum(x * x, axis=-1, keepdims=True)
        + jnp.sum(mu * mu, axis=-1)
        - 2.0 * jnp.einsum("...k,ok->...o", x, mu, precision="highest")
    )
    return jnp.sin(z) * jnp.exp(-0.5 * d * gamma)


if __name__ == "__main__":
    key = jax.random.PRNGKey(0)
    kx, kw, kb, kmu, kg = jax.random.split(key, 5)

    # GaborNet-style first layer: 2-D coordinates in, 32 Gabor features out.
    batch, seq, in_features, out_features = 2, 120, 2, 32
    quantization_interval = 2.0 * math.pi
    weight_scale = (4.0 * math.pi,) * in_features   # r = 4, integer as required

    # nn.Linear weight init from the module: per-column quantized levels,
    #   init = randint(0, 2*ws/q + 1) * q - ws
    n_levels = int(round(2.0 * weight_scale[0] / quantization_interval)) + 1
    weight = (
        jax.random.randint(kw, (out_features, in_features), 0, n_levels)
        .astype(jnp.float32) * quantization_interval - weight_scale[0]
    )
    # bias ~ U(-pi, pi)
    bias = jax.random.uniform(kb, (out_features,), jnp.float32, -math.pi, math.pi)
    # mu = 2*rand - 1  ~ U(-1, 1)
    mu = jax.random.uniform(kmu, (out_features, in_features), jnp.float32, -1.0, 1.0)
    # gamma ~ Gamma(alpha=1, beta=1)
    gamma = jax.random.gamma(kg, 1.0, (out_features,), jnp.float32)

    # Input coordinates in [-1, 1].  M = 240 is not a multiple of the row
    # tile, exercising the ragged-last-block (no-pad) writeback clipping.
    x = jax.random.uniform(kx, (batch, seq, in_features), jnp.float32, -1.0, 1.0)

    out = gabor_layer(x, weight, bias, mu, gamma)
    out = jax.block_until_ready(out)

    ref = _reference(x, weight, bias, mu, gamma)
    assert out.shape == (batch, seq, out_features)
    assert jnp.allclose(out, ref, atol=2e-5, rtol=2e-5), "mismatch vs reference"

    print("KERNEL_OK")
</pallas_src>

<mosaic_0001>
module attributes {stable_mosaic.version = 11 : i64} {
  func.func @_gabor_kernel(%arg0: i32, %arg1: memref<32x8xf32, #tpu.memory_space<vmem>>, %arg2: memref<7x128xf32, #tpu.memory_space<vmem>>, %arg3: memref<32x128xf32, #tpu.memory_space<vmem>>) attributes {dimension_semantics = [#tpu.dimension_semantics<parallel>], iteration_bounds = array<i64: 2>, scalar_prefetch = 0 : i64, scratch_operands = 0 : i64, tpu.core_type = #tpu.core_type<tc>, window_params = [{transform_indices = @transform_0, window_bounds = array<i64: 32, 8>}, {pipeline_mode = #tpu.pipeline_mode<synchronous>, transform_indices = @transform_1, window_bounds = array<i64: 7, 128>}, {transform_indices = @transform_2, window_bounds = array<i64: 32, 128>}]} {
    %c0 = arith.constant 0 : index
    %c0_0 = arith.constant 0 : index
    %0 = vector.load %arg1[%c0, %c0_0] : memref<32x8xf32, #tpu.memory_space<vmem>>, vector<32x8xf32>
    %1 = tpu.iota {dimensions = array<i32: 1>} : vector<32x128xi32>
    %c32_i32 = arith.constant 32 : i32
    %2 = vector.broadcast %c32_i32 : i32 to vector<32x128xi32>
    %3 = arith.cmpi slt, %1, %2 : vector<32x128xi32>
    %c64_i32 = arith.constant 64 : i32
    %4 = vector.broadcast %c64_i32 : i32 to vector<32x128xi32>
    %5 = arith.cmpi slt, %1, %4 : vector<32x128xi32>
    %c96_i32 = arith.constant 96 : i32
    %6 = vector.broadcast %c96_i32 : i32 to vector<32x128xi32>
    %7 = arith.cmpi slt, %1, %6 : vector<32x128xi32>
    %8 = vector.extract_strided_slice %0 {offsets = [0, 6], sizes = [32, 1], strides = [1, 1]} : vector<32x8xf32> to vector<32x1xf32>
    %9 = vector.shape_cast %8 : vector<32x1xf32> to vector<32x1xf32>
    %10 = vector.broadcast %9 : vector<32x1xf32> to vector<32x128xf32>
    %11 = vector.extract_strided_slice %0 {offsets = [0, 4], sizes = [32, 1], strides = [1, 1]} : vector<32x8xf32> to vector<32x1xf32>
    %12 = vector.shape_cast %11 : vector<32x1xf32> to vector<32x1xf32>
    %13 = vector.broadcast %12 : vector<32x1xf32> to vector<32x128xf32>
    %14 = arith.select %7, %13, %10 : vector<32x128xi1>, vector<32x128xf32>
    %15 = vector.extract_strided_slice %0 {offsets = [0, 2], sizes = [32, 1], strides = [1, 1]} : vector<32x8xf32> to vector<32x1xf32>
    %16 = vector.shape_cast %15 : vector<32x1xf32> to vector<32x1xf32>
    %17 = vector.broadcast %16 : vector<32x1xf32> to vector<32x128xf32>
    %18 = arith.select %5, %17, %14 : vector<32x128xi1>, vector<32x128xf32>
    %19 = vector.extract_strided_slice %0 {offsets = [0, 0], sizes = [32, 1], strides = [1, 1]} : vector<32x8xf32> to vector<32x1xf32>
    %20 = vector.shape_cast %19 : vector<32x1xf32> to vector<32x1xf32>
    %21 = vector.broadcast %20 : vector<32x1xf32> to vector<32x128xf32>
    %22 = arith.select %3, %21, %18 : vector<32x128xi1>, vector<32x128xf32>
    %23 = vector.extract_strided_slice %0 {offsets = [0, 7], sizes = [32, 1], strides = [1, 1]} : vector<32x8xf32> to vector<32x1xf32>
    %24 = vector.shape_cast %23 : vector<32x1xf32> to vector<32x1xf32>
    %25 = vector.broadcast %24 : vector<32x1xf32> to vector<32x128xf32>
    %26 = vector.extract_strided_slice %0 {offsets = [0, 5], sizes = [32, 1], strides = [1, 1]} : vector<32x8xf32> to vector<32x1xf32>
    %27 = vector.shape_cast %26 : vector<32x1xf32> to vector<32x1xf32>
    %28 = vector.broadcast %27 : vector<32x1xf32> to vector<32x128xf32>
    %29 = arith.select %7, %28, %25 : vector<32x128xi1>, vector<32x128xf32>
    %30 = vector.extract_strided_slice %0 {offsets = [0, 3], sizes = [32, 1], strides = [1, 1]} : vector<32x8xf32> to vector<32x1xf32>
    %31 = vector.shape_cast %30 : vector<32x1xf32> to vector<32x1xf32>
    %32 = vector.broadcast %31 : vector<32x1xf32> to vector<32x128xf32>
    %33 = arith.select %5, %32, %29 : vector<32x128xi1>, vector<32x128xf32>
    %34 = vector.extract_strided_slice %0 {offsets = [0, 1], sizes = [32, 1], strides = [1, 1]} : vector<32x8xf32> to vector<32x1xf32>
    %35 = vector.shape_cast %34 : vector<32x1xf32> to vector<32x1xf32>
    %36 = vector.broadcast %35 : vector<32x1xf32> to vector<32x128xf32>
    %37 = arith.select %3, %36, %33 : vector<32x128xi1>, vector<32x128xf32>
    %c4 = arith.constant 4 : index
    %c0_1 = arith.constant 0 : index
    %38 = vector.load %arg2[%c4, %c0_1] : memref<7x128xf32, #tpu.memory_space<vmem>>, vector<1x128xf32>
    %c0_2 = arith.constant 0 : index
    %c0_3 = arith.constant 0 : index
    %39 = vector.load %arg2[%c0_2, %c0_3] : memref<7x128xf32, #tpu.memory_space<vmem>>, vector<1x128xf32>
    %40 = vector.broadcast %39 : vector<1x128xf32> to vector<32x128xf32>
    %41 = arith.mulf %22, %40 : vector<32x128xf32>
    %42 = vector.broadcast %38 : vector<1x128xf32> to vector<32x128xf32>
    %43 = arith.addf %42, %41 : vector<32x128xf32>
    %c1 = arith.constant 1 : index
    %c0_4 = arith.constant 0 : index
    %44 = vector.load %arg2[%c1, %c0_4] : memref<7x128xf32, #tpu.memory_space<vmem>>, vector<1x128xf32>
    %45 = vector.broadcast %44 : vector<1x128xf32> to vector<32x128xf32>
    %46 = arith.mulf %37, %45 : vector<32x128xf32>
    %47 = arith.addf %43, %46 : vector<32x128xf32>
    %48 = arith.mulf %22, %22 : vector<32x128xf32>
    %49 = arith.mulf %37, %37 : vector<32x128xf32>
    %50 = arith.addf %48, %49 : vector<32x128xf32>
    %c5 = arith.constant 5 : index
    %c0_5 = arith.constant 0 : index
    %51 = vector.load %arg2[%c5, %c0_5] : memref<7x128xf32, #tpu.memory_space<vmem>>, vector<1x128xf32>
    %c6 = arith.constant 6 : index
    %c0_6 = arith.constant 0 : index
    %52 = vector.load %arg2[%c6, %c0_6] : memref<7x128xf32, #tpu.memory_space<vmem>>, vector<1x128xf32>
    %53 = vector.broadcast %52 : vector<1x128xf32> to vector<32x128xf32>
    %54 = arith.mulf %50, %53 : vector<32x128xf32>
    %55 = vector.broadcast %51 : vector<1x128xf32> to vector<32x128xf32>
    %56 = arith.addf %55, %54 : vector<32x128xf32>
    %c2 = arith.constant 2 : index
    %c0_7 = arith.constant 0 : index
    %57 = vector.load %arg2[%c2, %c0_7] : memref<7x128xf32, #tpu.memory_space<vmem>>, vector<1x128xf32>
    %58 = vector.broadcast %57 : vector<1x128xf32> to vector<32x128xf32>
    %59 = arith.mulf %22, %58 : vector<32x128xf32>
    %60 = arith.addf %56, %59 : vector<32x128xf32>
    %c3 = arith.constant 3 : index
    %c0_8 = arith.constant 0 : index
    %61 = vector.load %arg2[%c3, %c0_8] : memref<7x128xf32, #tpu.memory_space<vmem>>, vector<1x128xf32>
    %62 = vector.broadcast %61 : vector<1x128xf32> to vector<32x128xf32>
    %63 = arith.mulf %37, %62 : vector<32x128xf32>
    %64 = arith.addf %60, %63 : vector<32x128xf32>
    %65 = math.sin %47 : vector<32x128xf32>
    %66 = math.exp %64 : vector<32x128xf32>
    %67 = arith.mulf %65, %66 : vector<32x128xf32>
    %c0_9 = arith.constant 0 : index
    %c0_10 = arith.constant 0 : index
    %68 = vector.load %arg3[%c0_9, %c0_10] : memref<32x128xf32, #tpu.memory_space<vmem>>, vector<32x128xf32>
    tpu.vector_store %arg3[%c0_9, %c0_10], %67 {strides = array<i32>} : memref<32x128xf32, #tpu.memory_space<vmem>>, vector<32x128xf32>,
    return
  }
  func.func @transform_0(%arg0: i32) -> (i32, i32) {
    %c0_i32 = arith.constant 0 : i32
    %c0_i32_0 = arith.constant 0 : i32
    return %arg0, %c0_i32 : i32, i32
  }
  func.func @transform_1(%arg0: i32) -> (i32, i32) {
    %c0_i32 = arith.constant 0 : i32
    %c0_i32_0 = arith.constant 0 : i32
    %c0_i32_1 = arith.constant 0 : i32
    return %c0_i32, %c0_i32_0 : i32, i32
  }
  func.func @transform_2(%arg0: i32) -> (i32, i32) {
    %c0_i32 = arith.constant 0 : i32
    %c0_i32_0 = arith.constant 0 : i32
    return %arg0, %c0_i32 : i32, i32
  }
}

</mosaic_0001>

<bundles_post_ra>
// kernel: tpu_custom_call.1
= control target key start
LH: loop header
LB: loop body
LE: loop exit
PB: predicated region body
PF: predicated region fallthrough
CT: control target
= control target key end

     0   :  { %7 = vsyncpa [#allocation3], 0  ;;  %s1645_s0 = inlined_call_operand.vmem [shape: f32[60,8], index: 0, kind: input, shape index: {}]   ;;  %s1646_s1 = inlined_call_operand.vmem [shape: f32[7,128], index: 1, kind: input, shape index: {}]   ;;  %s1647_s2 = inlined_call_operand.hbm [shape: f32[60,128], index: 2, kind: output, shape index: {}]  }
   0x1   :  { %9 = vsyncpa [#allocation3 + $0x1], 0  ;;  %s1146_s9 = smov 0   ;;  %s1148_s10 = smov 0  }
   0x2   :  { %s1150_s11 = smov 0   ;;  %s1152_s12 = smov 0  }
   0x3 LB: > { %s1167_s13 = sadd.s32 4294967295, %s1112_s12   ;;  %s905_s14 = sadd.s32 4294967294, %s1112_s12   ;;  %s1112_s12 = sphi %s1152_s12, %s1657_s12   ;;  %s1108_s11 = sphi %s1150_s11, %s1656_s11   ;;  %s1104_s10 = sphi %s1148_s10, %s1655_s10   ;;  %s1100_s9 = sphi %s1146_s9, %s1654_s9  }
   0x4   : > { %s1171_s15 = sadd.s32 1, %s1112_s12   ;;  %s69_s16 = sadd.s32 1, %s1108_s11 }
   0x5   : > { %s66_s17 = ssub.s32 %s1112_s12, %s1171_s15  ;;  %p79_p0 = scmp.ne.s32.totalorder %s1108_s11, %s1104_s10 }
   0x6   : > { %p67_p1 = scmp.eq.s32.totalorder %s66_s17, 0  ;;  %p80_p2 = scmp.eq.s32.totalorder %s1167_s13, 1 }
   0x7   : > { %p85_p3 = scmp.ne.s32.totalorder %s1104_s10, %s1100_s9  ;;  %p86_p4 = scmp.eq.s32.totalorder %s905_s14, 1 }
   0x8   : > { %s1182_s18 = scalar_select %p67_p1, %s1108_s11, %s69_s16  }
   0x9   : > { %p1184_p5 = por %p80_p2, %p79_p0  ;;  %p1188_p6 = por %p86_p4, %p85_p3 }
   0xa   : > { %p908_p7 = scmp.ge.s32.totalorder %s1112_s12, 1  ;;  %p116_p8 = scmp.lt.s32.totalorder %s1112_s12, 3 }
   0xc   : > { %p117_p9 = pnand %p908_p7, %p116_p8 }
   0xd   : > { %s910_s21 = sshll.u32 (!%p117_p9), %s1167_s13, 2  ;;  %s940_s24 = sshll.u32 (!%p117_p9), %s1167_s13, 9 }
   0xe   : > { %120 = sbr.rel (%p117_p9) target bundleno = 379 (0x17b), region = 28  ;;  %p139_p10 = scmp.lt.s32.totalorder (!%p117_p9), %s910_s21, 7 }
   0xf   : > { %s1598_s28 = scalar_lea.hbm (!%p117_p9), %s1647_s2, %s940_s24  ;;  %s1128_s30 = smov (!%p117_p9), [#allocation2]  }
  0x10   : > { %s1056_s3 = sshll.u32 (!%p117_p9), %s1128_s30, 4  ;;  %s1057_s3 = int_to_ptr.vmem [resolvable:$false] %s1056_s3 }
  0x11   : > { %s1058_s4 = scalar_lea.vmem (!%p117_p9), %s1057_s3, 1024 }
  0x13   : > { %v1114_v0 = vmov 6   ;;  %s1659_s21 = smov (!%p139_p10, %s910_s21), 7  ;;  %v1115_v5 = vmov 4   ;;  %v1116_v6 = vmov 2   ;;  %v1117_v7 = vmov 0  }
  0x14   : > { %1013 = vset.pattern.permute.xlu1 %v1114_v0  ;;  %1012 = vset.pattern.permute.xlu0 %v1114_v0  ;;  %s911_s22 = sshll.u32 %s1659_s21, 3  ;;  %v1118_v8 = vmov 7   ;;  %v1119_v9 = vmov 5   ;;  %v1120_v10 = vmov 3   ;;  %v1121_v11 = vmov 1   ;;  %s135_s21 = sand.u32 1, %s1104_s10  }
  0x15   : > { %s142_s25 = scalar_lea.vmem %s1645_s0, %s911_s22  ;;  %v149_v12 = vlaneseq  ;;  %v1218_v34 = vld [vmem:[%s1646_s1] ss:$0 sm:$0xff]  ;;  %v1223_v35 = vld [vmem:[%s1646_s1 + $0x2] ss:$0 sm:$0xff]  ;;  %v1238_v39 = vld [vmem:[%s1646_s1 + $0x4] ss:$0 sm:$0xff] }
  0x16   : > { %v147_v1 = vld [vmem:[%s142_s25 + $0x10] sm:$0xff]  ;;  %v145_v2 = vld [vmem:[%s142_s25] sm:$0xff]  ;;  %v148_v3 = vld [vmem:[%s142_s25 + $0x18] sm:$0xff]  ;;  %s909_s22 = sshll.u32 %s135_s21, 5  ;;  %s1605_s13 = scalar_lea.sflag [#allocation3], %s135_s21 }
  0x17   : > { %166 = vperm.xlu1 %1013, %v147_v1   ;;  %156 = vperm.xlu0 %1012, %v145_v2   ;;  %v146_v4 = vld [vmem:[%s142_s25 + $0x8] sm:$0xff]  ;;  %v1198_v15 = vand.u32 127, %v149_v12  ;;  %v1257_v59 = vld [vmem:[%s1646_s1 + $0x1] ss:$0 sm:$0xff]  ;;  %s1554_s23 = scalar_lea.vmem [#allocation2], %s909_s22 }
  0x18   : > { %s843_s25 = sshll.u32 %s1554_s23, 4  ;;  %s1600_s25 = int_to_ptr.vmem [resolvable:$true] %s843_s25 }
  0x19   : > { %vm153_vm0 = vcmp.lt.s32.totalorder %v1198_v15, 96  ;;  %vm152_vm1 = vcmp.lt.s32.totalorder %v1198_v15, 64  ;;  %vm151_vm2 = vcmp.lt.s32.totalorder %v1198_v15, 32  ;;  %s1052_s29 = scalar_lea.vmem %s1600_s25, 512  ;;  %p1059_p0 = scmp.lt.s32.totalorder %s1600_s25, %s1057_s3 }
  0x1a   : > { %p1053_p11 = scmp.ne.s32.totalorder %s1600_s25, %s1052_s29  ;;  %p1060_p1 = scmp.lt.s32.totalorder %s1058_s4, %s1052_s29 }
  0x1b   : > { %171 = vperm.xlu1 %1013, %v148_v3   ;;  %161 = vperm.xlu0 %1012, %v146_v4  }
  0x1c   : > { %p1054_p12 = pnand %p1053_p11, %p1184_p5  ;;  %p1061_p2 = por %p1060_p1, %p1059_p0 }
  0x1e   : > { %p1055_p13 = pneg %p1054_p12 }
  0x1f   : > { %1015 = vset.pattern.permute.xlu1 %v1115_v5  ;;  %1014 = vset.pattern.permute.xlu0 %v1115_v5 }
  0x20   : > { %179 = vperm.xlu1 %1015, %v146_v4   ;;  %175 = vperm.xlu0 %1014, %v145_v2   ;;  %p1062_p3 = pnand %p1061_p2, %p1055_p13 }
  0x24   : > { %183 = vperm.xlu1 %1015, %v147_v1   ;;  %187 = vperm.xlu0 %1014, %v148_v3  }
  0x28   : > { %1016 = vset.pattern.permute.xlu1 %v1116_v6  ;;  %1017 = vset.pattern.permute.xlu0 %v1116_v6 }
  0x29   : > { %195 = vperm.xlu1 %1016, %v145_v2   ;;  %199 = vperm.xlu0 %1017, %v146_v4  }
  0x2d   : > { %203 = vperm.xlu1 %1016, %v147_v1   ;;  %1018 = vset.pattern.permute.xlu0 %v1117_v7 }
  0x2e   : > { %215 = vperm.xlu0 %1018, %v145_v2  }
  0x31   : > { %207 = vperm.xlu1 %1016, %v148_v3  }
  0x32   : > { %227 = vperm.xlu0 %1018, %v148_v3  }
  0x35   : > { %1019 = vset.pattern.permute.xlu1 %v1117_v7 }
  0x36   : > { %219 = vperm.xlu1 %1019, %v146_v4   ;;  %1021 = vset.pattern.permute.xlu0 %v1118_v8 }
  0x37   : > { %239 = vperm.xlu0 %1021, %v146_v4  }
  0x3a   : > { %223 = vperm.xlu1 %1019, %v147_v1  }
  0x3b   : > { %1022 = vset.pattern.permute.xlu0 %v1119_v9 }
  0x3c   : > { %251 = vperm.xlu0 %1022, %v145_v2  }
  0x3e   : > { %1020 = vset.pattern.permute.xlu1 %v1118_v8 }
  0x3f   : > { %235 = vperm.xlu1 %1020, %v145_v2  }
  0x40   : > { %263 = vperm.xlu0 %1022, %v148_v3  }
  0x43   : > { %243 = vperm.xlu1 %1020, %v147_v1  }
  0x44   : > { %1025 = vset.pattern.permute.xlu0 %v1120_v10 }
  0x45   : > { %275 = vperm.xlu0 %1025, %v146_v4  }
  0x47   : > { %247 = vperm.xlu1 %1020, %v148_v3  }
  0x49   : > { %1026 = vset.pattern.permute.xlu0 %v1121_v11 }
  0x4a   : > { %291 = vperm.xlu0 %1026, %v145_v2  }
  0x4b   : > { %1023 = vset.pattern.permute.xlu1 %v1119_v9 }
  0x4c   : > { %255 = vperm.xlu1 %1023, %v146_v4  }
  0x4e   : > { %303 = vperm.xlu0 %1026, %v148_v3  }
  0x50   : > { %259 = vperm.xlu1 %1023, %v147_v1  }
  0x54   : > { %1024 = vset.pattern.permute.xlu1 %v1120_v10  ;;  %v1285_v10 = vld [vmem:[%s1646_s1 + $0x5] ss:$0 sm:$0xff] }
  0x55   : > { %271 = vperm.xlu1 %1024, %v145_v2  }
  0x59   : > { %279 = vperm.xlu1 %1024, %v147_v1  }
  0x5d   : > { %283 = vperm.xlu1 %1024, %v148_v3  }
  0x61   : > { %1027 = vset.pattern.permute.xlu1 %v1121_v11 }
  0x62   : > { %295 = vperm.xlu1 %1027, %v146_v4   ;;  %v1272_v4 = vld [vmem:[%s1646_s1 + $0x6] ss:$0 sm:$0xff] }
  0x66   : > { %299 = vperm.xlu1 %1027, %v147_v1  }
  0x92   : > { %v167_v13 = vpop.permute.xlu1 %166  ;;  %v157_v14 = vpop.permute.xlu0 %156 }
  0x96   : > { %v172_v16 = vpop.permute.xlu1 %171  ;;  %v162_v17 = vpop.permute.xlu0 %161 }
  0x9b   : > { %v180_v18 = vpop.permute.xlu1 %179  ;;  %v176_v19 = vpop.permute.xlu0 %175 }
  0x9c   : > { %v191_v20 = vsel %vm153_vm0, %v180_v18, %v162_v17  ;;  %v190_v49 = vsel %vm153_vm0, %v176_v19, %v157_v14 }
  0x9f   : > { %v184_v21 = vpop.permute.xlu1 %183  ;;  %v188_v22 = vpop.permute.xlu0 %187 }
  0xa0   : > { %v192_v23 = vsel %vm153_vm0, %v184_v21, %v167_v13  ;;  %v193_v61 = vsel %vm153_vm0, %v188_v22, %v172_v16  ;;  %v1294_v16 = vld [vmem:[%s1646_s1 + $0x3] ss:$0 sm:$0xff] }
  0xa4   : > { %v196_v24 = vpop.permute.xlu1 %195  ;;  %v200_v25 = vpop.permute.xlu0 %199 }
  0xa5   : > { %v211_v26 = vsel %vm152_vm1, %v200_v25, %v191_v20  ;;  %v210_v50 = vsel %vm152_vm1, %v196_v24, %v190_v49 }
  0xa8   : > { %v204_v27 = vpop.permute.xlu1 %203 }
  0xa9   : > { %v212_v28 = vsel %vm152_vm1, %v204_v27, %v192_v23  ;;  %v216_v32 = vpop.permute.xlu0 %215 }
  0xaa   : > { %v230_v53 = vsel %vm151_vm2, %v216_v32, %v210_v50 }
  0xab   : > { %v316_v55 = vmul.f32 %v1218_v34, %v230_v53  ;;  %v341_v62 = vmul.f32 %v230_v53, %v230_v53  ;;  %v376_v14 = vmul.f32 %v1223_v35, %v230_v53 }
  0xac   : > { %v208_v29 = vpop.permute.xlu1 %207 }
  0xad   : > { %v228_v40 = vpop.permute.xlu0 %227  ;;  %v324_v0 = vadd.f32 %v1238_v39, %v316_v55  ;;  %v213_v1 = vsel %vm152_vm1, %v208_v29, %v193_v61 }
  0xae   : > { %v233_v9 = vsel %vm151_vm2, %v228_v40, %v213_v1 }
  0xaf   : > { %v319_v19 = vmul.f32 %v1218_v34, %v233_v9  ;;  %v344_v29 = vmul.f32 %v233_v9, %v233_v9 }
  0xb1   : > { %v220_v30 = vpop.permute.xlu1 %219 }
  0xb2   : > { %v1213_v31 = vsel %vm151_vm2, %v220_v30, %v211_v26  ;;  %v240_v43 = vpop.permute.xlu0 %239 }
  0xb5   : > { %v224_v33 = vpop.permute.xlu1 %223 }
  0xb6   : > { %v1227_v36 = vsel %vm151_vm2, %v224_v33, %v212_v28 }
  0xb7   : > { %v318_v37 = vmul.f32 %v1218_v34, %v1227_v36  ;;  %v1233_v38 = vmul.f32 %v1223_v35, %v1227_v36  ;;  %v252_v46 = vpop.permute.xlu0 %251 }
  0xb9   : > { %v1241_v41 = vadd.f32 %v1238_v39, %v318_v37  ;;  %v327_v37 = vadd.f32 %v1238_v39, %v319_v19 }
  0xba   : > { %v236_v42 = vpop.permute.xlu1 %235 }
  0xbb   : > { %v264_v47 = vpop.permute.xlu0 %263  ;;  %v266_v57 = vsel %vm153_vm0, %v252_v46, %v236_v42 }
  0xbe   : > { %v244_v44 = vpop.permute.xlu1 %243 }
  0xc0   : > { %v276_v51 = vpop.permute.xlu0 %275 }
  0xc2   : > { %v248_v45 = vpop.permute.xlu1 %247 }
  0xc3   : > { %v269_v20 = vsel %vm153_vm0, %v264_v47, %v248_v45 }
  0xc5   : > { %v292_v56 = vpop.permute.xlu0 %291 }
  0xc7   : > { %v256_v48 = vpop.permute.xlu1 %255 }
  0xc8   : > { %v267_v30 = vsel %vm153_vm0, %v256_v48, %v240_v43 }
  0xc9   : > { %v304_v18 = vpop.permute.xlu0 %303  ;;  %v287_v47 = vsel %vm152_vm1, %v276_v51, %v267_v30 }
  0xcb   : > { %v260_v52 = vpop.permute.xlu1 %259 }
  0xcc   : > { %v268_v54 = vsel %vm153_vm0, %v260_v52, %v244_v44  ;;  %v379_v52 = vmul.f32 %v1223_v35, %v233_v9 }
  0xd0   : > { %v272_v58 = vpop.permute.xlu1 %271 }
  0xd1   : > { %v286_v60 = vsel %vm152_vm1, %v272_v58, %v266_v57 }
  0xd2   : > { %v306_v63 = vsel %vm151_vm2, %v292_v56, %v286_v60 }
  0xd3   : > { %v333_v2 = vmul.f32 %v1257_v59, %v306_v63  ;;  %v345_v3 = vmul.f32 %v306_v63, %v306_v63  ;;  %v389_v26 = vmul.f32 %v1294_v16, %v306_v63 }
  0xd4   : > { %v280_v5 = vpop.permute.xlu1 %279 }
  0xd5   : > { %v1274_v6 = vadd.f32 %v333_v2, %v324_v0  ;;  %v349_v7 = vadd.f32 %v345_v3, %v341_v62  ;;  %v1278_v8 = vsel %vm152_vm1, %v280_v5, %v268_v54  ;;  %v342_v54 = vmul.f32 %v1213_v31, %v1213_v31 }
  0xd6   : > { %v1122_v62 = vmov 683565275   ;;  %v1123_v0 = vmov 2475754826   ;;  %v1124_v2 = vmov 2131351028  }
  0xd7   : > { %v359_v11 = vmul.f32 %v1272_v4, %v349_v7  ;;  %v397_v12 = vand.u32 2147483647, %v1274_v6  ;;  %v400_v13 = vand.u32 2139095040, %v1274_v6  ;;  %vm399_vm14 = vcmp.lt.s32.totalorder %v1274_v6, 0 }
  0xd8   : > { %v284_v17 = vpop.permute.xlu1 %283 }
  0xd9   : > { %v367_v21 = vadd.f32 %v1285_v10, %v359_v11  ;;  %v401_v22 = vshrl.u32 %v400_v13, 23  ;;  %v404_v23 = vand.u32 8388607, %v397_v12  ;;  %v289_v24 = vsel %vm152_vm1, %v284_v17, %v269_v20 }
  0xda   : > { %v309_v28 = vsel %vm151_vm2, %v304_v18, %v289_v24  ;;  %v1125_v11 = vmov 2102212464   ;;  %v1126_v17 = vmov 920167782   ;;  %v1127_v20 = vmov 1326507024  }
  0xdb   : > { %v380_v25 = vadd.f32 %v376_v14, %v367_v21  ;;  %v919_v27 = vadd.s32 4294967169, %v401_v22  ;;  %v336_v32 = vmul.f32 %v1257_v59, %v309_v28  ;;  %v348_v33 = vmul.f32 %v309_v28, %v309_v28 }
  0xdc   : > { %v405_v45 = vor.u32 8388608, %v404_v23  ;;  %v392_v51 = vmul.f32 %v1294_v16, %v309_v28  ;;  %vm1421_vm0 = vcmp.le.f32.partialorder %v397_v12, 0.7853982 }
  0xdd   : > { %v1311_v40 = vadd.f32 %v389_v26, %v380_v25  ;;  %v407_v42 = vadd.s32 1, %v919_v27  ;;  %v296_v44 = vpop.permute.xlu1 %295  ;;  %v352_v46 = vadd.f32 %v348_v33, %v344_v29  ;;  %v1315_v49 = vadd.f32 %v336_v32, %v327_v37 }
  0xde   : > { %v1320_v48 = vsel %vm151_vm2, %v296_v44, %v287_v47  ;;  %v1325_v56 = vshll.u32 %v405_v45, 8 }
  0xdf   : > { %vm408_vm3 = vcmp.gt.s32.totalorder %v407_v42, 0  ;;  %v362_v43 = vmul.f32 %v1272_v4, %v352_v46  ;;  %v709_v60 = vand.u32 2147483647, %v1315_v49  ;;  %v346_v61 = vmul.f32 %v1320_v48, %v1320_v48 }
  0xe0   : > { %v409_v50 = vsel %vm408_vm3, %v407_v42, 0  ;;  %v712_v5 = vand.u32 2139095040, %v1315_v49  ;;  %v390_v15 = vmul.f32 %v1294_v16, %v1320_v48  ;;  %v813_v12 = vmul.f32 1.442695, %v1311_v40 }
  0xe1   : > { %v411_v53 = vand.u32 31, %v409_v50  ;;  %v410_v55 = vshrl.u32 %v409_v50, 5  ;;  %v370_v58 = vadd.f32 %v1285_v10, %v362_v43 }
  0xe2   : > { %v713_v28 = vshrl.u32 %v712_v5, 23  ;;  %v350_v5 = vadd.f32 %v346_v61, %v342_v54  ;;  %1028 = vpow2.f32 %v813_v12 }
  0xe3   : > { %v412_v57 = vsub.s32 32, %v411_v53  ;;  %v414_v63 = vshll.u32 %v1122_v62, %v411_v53  ;;  %v417_v1 = vshll.u32 %v1123_v0, %v411_v53  ;;  %v420_v3 = vshll.u32 %v1124_v2, %v411_v53 }
  0xe4   : > { %v423_v14 = vshll.u32 %v1125_v11, %v411_v53  ;;  %v426_v19 = vshll.u32 %v1126_v17, %v411_v53  ;;  %vm429_vm4 = vcmp.lt.s32.totalorder %v410_v55, 1  ;;  %v383_v25 = vadd.f32 %v379_v52, %v370_v58 }
  0xe5   : > { %v415_v7 = vshrl.u32 %v1123_v0, %v412_v57  ;;  %v418_v9 = vshrl.u32 %v1124_v2, %v412_v57  ;;  %v421_v13 = vshrl.u32 %v1125_v11, %v412_v57  ;;  %v424_v18 = vshrl.u32 %v1126_v17, %v412_v57 }
  0xe6   : > { %v427_v21 = vshrl.u32 %v1127_v20, %v412_v57  ;;  %vm432_vm5 = vcmp.lt.s32.totalorder %v410_v55, 4  ;;  %v413_v29 = vshrl.u32 %v1122_v62, %v412_v57  ;;  %vm431_vm6 = vcmp.lt.s32.totalorder %v410_v55, 3 }
  0xe7   : > { %v416_v22 = vor.u32 %v415_v7, %v414_v63  ;;  %v419_v23 = vor.u32 %v418_v9, %v417_v1  ;;  %v422_v24 = vor.u32 %v421_v13, %v420_v3  ;;  %v425_v26 = vor.u32 %v424_v18, %v423_v14 }
  0xe8   : > { %v428_v27 = vor.u32 %v427_v21, %v426_v19  ;;  %v1346_v44 = vadd.f32 %v392_v51, %v383_v25  ;;  %vm430_vm7 = vcmp.lt.s32.totalorder %v410_v55, 2  ;;  %v931_v47 = vadd.s32 4294967169, %v713_v28 }
  0xe9   : > { %v434_v30 = vsel %vm432_vm5, %v422_v24, 2102212464  ;;  %v437_v32 = vsel %vm429_vm4, %v416_v22, %v419_v23  ;;  %v441_v33 = vsel %vm429_vm4, %v419_v23, %v422_v24  ;;  %v438_v37 = vsel %vm432_vm5, %v425_v26, 920167782 }
  0xea   : > { %v442_v42 = vsel %vm432_vm5, %v428_v27, 1326507024  ;;  %v439_v45 = vsel %vm431_vm6, %v422_v24, %v438_v37  ;;  %v433_v50 = vsel %vm429_vm4, %v413_v29, %v416_v22  ;;  %v435_v43 = vsel %vm431_vm6, %v419_v23, %v434_v30 }
  0xeb   : > { %v443_v46 = vsel %vm431_vm6, %v425_v26, %v442_v42  ;;  %v440_v52 = vsel %vm430_vm7, %v437_v32, %v439_v45  ;;  %v317_v51 = vmul.f32 %v1218_v34, %v1213_v31  ;;  %v719_v3 = vadd.s32 1, %v931_v47 }
  0xec   : > { %v444_v53 = vsel %vm430_vm7, %v441_v33, %v443_v46  ;;  %v1354_v63 = vmul.u32.u64.low %v1325_v56, %v440_v52  ;;  %v1355_v1 = vmul.u32.u64.high %v1325_v56, %v440_v52, %v1354_v63  ;;  %v436_v7 = vsel %vm430_vm7, %v433_v50, %v435_v43 }
  0xed   : > { %v1350_v57 = vmul.u32.u64.low %v1325_v56, %v444_v53  ;;  %v1351_v58 = vmul.u32.u64.high %v1325_v56, %v444_v53, %v1350_v57  ;;  %v716_v55 = vand.u32 8388607, %v709_v60  ;;  %vm720_vm8 = vcmp.gt.s32.totalorder %v719_v3, 0 }
  0xee   : > { %v334_v9 = vmul.f32 %v1257_v59, %v1320_v48  ;;  %v455_v13 = vadd.s32 1, %v1355_v1  ;;  %v721_v14 = vsel %vm720_vm8, %v719_v3, 0  ;;  %v360_v18 = vmul.f32 %v1272_v4, %v350_v5 }
  0xef   : > { %vm454_vm9 = vc.u32 %v1351_v58, %v1354_v63  ;;  %v325_v34 = vadd.f32 %v1238_v39, %v317_v51  ;;  %v452_v54 = vmul.u32 %v1325_v56, %v436_v7  ;;  %v723_v61 = vand.u32 31, %v721_v14  ;;  %v300_v51 = vpop.permute.xlu1 %299 }
  0xf0   : > { %v377_v19 = vmul.f32 %v1223_v35, %v1213_v31  ;;  %v456_v21 = vsel %vm454_vm9, %v455_v13, %v1355_v1  ;;  %v717_v22 = vor.u32 8388608, %v716_v55  ;;  %v722_v24 = vshrl.u32 %v721_v14, 5 }
  0xf1   : > { %v457_v23 = vadd.s32 %v456_v21, %v452_v54  ;;  %v724_v25 = vsub.s32 32, %v723_v61  ;;  %v1373_v26 = vadd.f32 %v334_v9, %v325_v34  ;;  %v726_v27 = vshll.u32 %v1122_v62, %v723_v61 }
  0xf2   : > { %v729_v28 = vshll.u32 %v1123_v0, %v723_v61  ;;  %v732_v39 = vshll.u32 %v1124_v2, %v723_v61  ;;  %v368_v56 = vadd.f32 %v1285_v10, %v360_v18  ;;  %v735_v35 = vshll.u32 %v1125_v11, %v723_v61 }
  0xf3   : > { %v458_v29 = vadd.s32 536870912, %v457_v23  ;;  %v727_v30 = vshrl.u32 %v1123_v0, %v724_v25  ;;  %v730_v31 = vshrl.u32 %v1124_v2, %v724_v25  ;;  %v733_v32 = vshrl.u32 %v1125_v11, %v724_v25 }
  0xf4   : > { %v736_v33 = vshrl.u32 %v1126_v17, %v724_v25  ;;  %v738_v37 = vshll.u32 %v1126_v17, %v723_v61  ;;  %v739_v42 = vshrl.u32 %v1127_v20, %v724_v25  ;;  %v504_v50 = vand.u32 2139095040, %v1373_v26 }
  0xf5   : > { %v459_v45 = vshrl.u32 %v458_v29, 30  ;;  %v728_v46 = vor.u32 %v727_v30, %v726_v27  ;;  %v731_v47 = vor.u32 %v730_v31, %v729_v28  ;;  %v734_v43 = vor.u32 %v733_v32, %v732_v39 }
  0xf6   : > { %v737_v52 = vor.u32 %v736_v33, %v735_v35  ;;  %v740_v53 = vor.u32 %v739_v42, %v738_v37  ;;  %vm741_vm10 = vcmp.lt.s32.totalorder %v722_v24, 1  ;;  %vm743_vm11 = vcmp.lt.s32.totalorder %v722_v24, 3 }
  0xf7   : > { %v460_v57 = vshll.u32 %v459_v45, 30  ;;  %vm744_vm12 = vcmp.lt.s32.totalorder %v722_v24, 4  ;;  %v749_v1 = vsel %vm741_vm10, %v728_v46, %v731_v47  ;;  %v753_v7 = vsel %vm741_vm10, %v731_v47, %v734_v43 }
  0xf8   : > { %v746_v3 = vsel %vm744_vm12, %v734_v43, 2102212464  ;;  %v750_v5 = vsel %vm744_vm12, %v737_v52, 920167782  ;;  %v754_v55 = vsel %vm744_vm12, %v740_v53, 1326507024  ;;  %v725_v13 = vshrl.u32 %v1122_v62, %v724_v25 }
  0xf9   : > { %v461_v9 = vsub.s32 %v457_v23, %v460_v57  ;;  %vm742_vm13 = vcmp.lt.s32.totalorder %v722_v24, 2  ;;  %v751_v14 = vsel %vm743_vm11, %v734_v43, %v750_v5  ;;  %v755_v34 = vsel %vm743_vm11, %v737_v52, %v754_v55 }
  0xfa   : > { %v752_v18 = vsel %vm742_vm13, %v749_v1, %v751_v14  ;;  %v757_v54 = vshll.u32 %v717_v22, 8  ;;  %v308_v61 = vsel %vm151_vm2, %v300_v51, %v1278_v8  ;;  %v745_v27 = vsel %vm741_vm10, %v725_v13, %v728_v46 }
  0xfb   : > { %v463_v21 = vsub.s32 0, %v461_v9  ;;  %v747_v28 = vsel %vm743_vm11, %v731_v47, %v746_v3  ;;  %v756_v39 = vsel %vm742_vm13, %v753_v7, %v755_v34  ;;  %v381_v35 = vadd.f32 %v377_v19, %v368_v56 }
  0xfc   : > { %v1397_v23 = vmul.u32.u64.low %v757_v54, %v756_v39  ;;  %v1398_v29 = vmul.u32.u64.high %v757_v54, %v756_v39, %v1397_v23  ;;  %v1400_v25 = vmul.u32.u64.low %v757_v54, %v752_v18  ;;  %v1401_v30 = vmul.u32.u64.high %v757_v54, %v752_v18, %v1400_v25 }
  0xfd   : > { %v920_v31 = vmin.u32 %v463_v21, %v461_v9  ;;  %v505_v22 = vshrl.u32 %v504_v50, 23  ;;  %v748_v32 = vsel %vm742_vm13, %v745_v27, %v747_v28  ;;  %v335_v8 = vmul.f32 %v1257_v59, %v308_v61 }
  0xfe   : > { %v347_v33 = vmul.f32 %v308_v61, %v308_v61  ;;  %v343_v24 = vmul.f32 %v1227_v36, %v1227_v36  ;;  %v483_v42 = vsub.s32 4, %v459_v45  ;;  %vm766_vm15 = vc.u32 %v1398_v29, %v1400_v25 }
  0xff   : > { %v465_v37 = vclz %v920_v31  ;;  %v767_v19 = vadd.s32 1, %v1401_v30  ;;  %v1413_v56 = vadd.f32 %v390_v15, %v381_v35  ;;  %v501_v46 = vand.u32 2147483647, %v1373_v26 }
 0x100   : > { %v764_v47 = vmul.u32 %v757_v54, %v748_v32  ;;  %v923_v59 = vadd.s32 4294967169, %v505_v22  ;;  %v1417_v50 = vadd.f32 %v335_v8, %v1241_v41  ;;  %v351_v52 = vadd.f32 %v347_v33, %v343_v24 }
 0x101   : > { %v921_v48 = vadd.s32 4294967294, %v465_v37  ;;  %v768_v43 = vsel %vm766_vm15, %v767_v19, %v1401_v30  ;;  %v1427_v53 = vmul.f32 %v1294_v16, %v308_v61  ;;  %v484_v57 = vsel %vm399_vm14, %v483_v42, %v459_v45 }
 0x102   : > { %v769_v1 = vadd.s32 %v768_v43, %v764_v47  ;;  %v511_v51 = vadd.s32 1, %v923_v59  ;;  %v453_v41 = vadd.s32 %v1354_v63, %v1351_v58  ;;  %v361_v5 = vmul.f32 %v1272_v4, %v351_v52 }
 0x103   : > { %vm922_vm1 = vcmp.lt.s32.totalorder %v921_v48, 0  ;;  %v508_v16 = vand.u32 8388607, %v501_v46  ;;  %v486_v45 = vsel %vm1421_vm0, 0, %v484_v57  ;;  %v608_v30 = vand.u32 2139095040, %v1417_v50 }
 0x104   : > { %v468_v3 = vsel %vm922_vm1, 0, %v921_v48  ;;  %v770_v13 = vadd.s32 536870912, %v769_v1  ;;  %vm512_vm2 = vcmp.gt.s32.totalorder %v511_v51, 0  ;;  %v369_v18 = vadd.f32 %v1285_v10, %v361_v5 }
 0x105   : > { %v469_v7 = vsub.s32 32, %v468_v3  ;;  %v473_v55 = vsub.s32 4294967266, %v468_v3  ;;  %v470_v14 = vshll.u32 %v461_v9, %v468_v3  ;;  %v513_v40 = vsel %vm512_vm2, %v511_v51, 0 }
 0x106   : > { %v1440_v63 = vshrl.u32 %v770_v13, 30  ;;  %v515_v54 = vand.u32 31, %v513_v40  ;;  %v1443_v4 = vadd.f32 %v1233_v38, %v369_v18  ;;  %v1446_v9 = vadd.s32 3, %v486_v45 }
 0x107   : > { %v471_v34 = vshrl.u32 %v453_v41, %v469_v7  ;;  %v474_v58 = vadd.s32 127, %v473_v55  ;;  %v509_v10 = vor.u32 8388608, %v508_v16  ;;  %v514_v24 = vshrl.u32 %v513_v40, 5 }
 0x108   : > { %v772_v27 = vshll.u32 %v1440_v63, 30  ;;  %v516_v28 = vsub.s32 32, %v515_v54  ;;  %v518_v31 = vshll.u32 %v1122_v62, %v515_v54  ;;  %v521_v38 = vshll.u32 %v1123_v0, %v515_v54 }
 0x109   : > { %v472_v61 = vor.u32 %v471_v34, %v470_v14  ;;  %v475_v21 = vshll.u32 %v474_v58, 23  ;;  %v524_v37 = vshll.u32 %v1124_v2, %v515_v54  ;;  %v527_v42 = vshll.u32 %v1125_v11, %v515_v54 }
 0x10a   : > { %v1448_v23 = vsub.s32 %v769_v1, %v772_v27  ;;  %v519_v35 = vshrl.u32 %v1123_v0, %v516_v28  ;;  %v522_v22 = vshrl.u32 %v1124_v2, %v516_v28  ;;  %v525_v33 = vshrl.u32 %v1125_v11, %v516_v28 }
 0x10b   : > { %v476_v39 = vor.u32 4788187, %v475_v21  ;;  %v479_v15 = vcvt.s32.f32 %v472_v61  ;;  %v528_v19 = vshrl.u32 %v1126_v17, %v516_v28  ;;  %v530_v1 = vshll.u32 %v1126_v17, %v515_v54  ;;  %v1479_v61 = vpop.eup %1028 }
 0x10c   : > { %v775_v8 = vsub.s32 0, %v1448_v23  ;;  %v520_v59 = vor.u32 %v519_v35, %v518_v31  ;;  %v523_v43 = vor.u32 %v522_v22, %v521_v38  ;;  %v526_v52 = vor.u32 %v525_v33, %v524_v37 }
 0x10d   : > { %v477_v32 = vand.u32 2147483647, %v476_v39  ;;  %v529_v57 = vor.u32 %v528_v19, %v527_v42  ;;  %v531_v51 = vshrl.u32 %v1127_v20, %v516_v28  ;;  %v765_v3 = vadd.s32 %v1400_v25, %v1398_v29 }
 0x10e   : > { %v932_v47 = vmin.u32 %v775_v8, %v1448_v23  ;;  %v1465_v5 = vshll.u32 %v509_v10, 8  ;;  %v517_v7 = vshrl.u32 %v1122_v62, %v516_v28  ;;  %vm533_vm3 = vcmp.lt.s32.totalorder %v514_v24, 1 }
 0x10f   : > { %v480_v48 = vmul.f32 %v479_v15, %v477_v32  ;;  %v532_v55 = vor.u32 %v531_v51, %v530_v1  ;;  %v609_v13 = vshrl.u32 %v608_v30, 23  ;;  %vm535_vm4 = vcmp.lt.s32.totalorder %v514_v24, 3 }
 0x110   : > { %v777_v12 = vclz %v932_v47  ;;  %vm536_vm5 = vcmp.lt.s32.totalorder %v514_v24, 4  ;;  %v541_v25 = vsel %vm533_vm3, %v520_v59, %v523_v43  ;;  %vm534_vm7 = vcmp.lt.s32.totalorder %v514_v24, 2 }
 0x111   : > { %v481_v41 = vxor.u32 2147483648, %v480_v48  ;;  %v538_v29 = vsel %vm536_vm5, %v526_v52, 2102212464  ;;  %v542_v18 = vsel %vm536_vm5, %v529_v57, 920167782  ;;  %v537_v40 = vsel %vm533_vm3, %v517_v7, %v520_v59 }
 0x112   : > { %v933_v14 = vadd.s32 4294967294, %v777_v12  ;;  %v543_v34 = vsel %vm535_vm4, %v526_v52, %v542_v18  ;;  %v539_v27 = vsel %vm535_vm4, %v523_v43, %v538_v29  ;;  %v545_v28 = vsel %vm533_vm3, %v523_v43, %v526_v52 }
 0x113   : > { %v482_v16 = vsel %vm399_vm14, %v481_v41, %v480_v48  ;;  %v544_v54 = vsel %vm534_vm7, %v541_v25, %v543_v34  ;;  %v546_v10 = vsel %vm536_vm5, %v532_v55, 1326507024  ;;  %v1493_v32 = vadd.f32 %v1427_v53, %v1443_v4 }
 0x114   : > { %v485_v45 = vsel %vm1421_vm0, %v1274_v6, %v482_v16  ;;  %vm934_vm6 = vcmp.lt.s32.totalorder %v933_v14, 0  ;;  %v1486_v30 = vmul.u32.u64.low %v1465_v5, %v544_v54  ;;  %v1487_v31 = vmul.u32.u64.high %v1465_v5, %v544_v54, %v1486_v30 }
 0x115   : > { %1030 = vcosq.f32 %v485_v45  ;;  %v780_v58 = vsel %vm934_vm6, 0, %v933_v14  ;;  %v547_v22 = vsel %vm535_vm4, %v529_v57, %v546_v10  ;;  %v795_v15 = vsub.s32 4, %v1440_v63 }
 0x116   : > { %1032 = vsinq.f32 %v485_v45  ;;  %v781_v36 = vsub.s32 32, %v780_v58  ;;  %v785_v21 = vsub.s32 4294967266, %v780_v58  ;;  %v782_v39 = vshll.u32 %v1448_v23, %v780_v58 }
 0x117   : > { %v540_v8 = vsel %vm534_vm7, %v537_v40, %v539_v27  ;;  %v548_v23 = vsel %vm534_vm7, %v545_v28, %v547_v22  ;;  %v927_v33 = vadd.s32 4294967169, %v609_v13  ;;  %v559_v47 = vadd.s32 1, %v1487_v31 }
 0x118   : > { %v783_v35 = vshrl.u32 %v765_v3, %v781_v36  ;;  %v786_v38 = vadd.s32 127, %v785_v21  ;;  %v1499_v19 = vmul.u32.u64.low %v1465_v5, %v548_v23  ;;  %v1500_v48 = vmul.u32.u64.high %v1465_v5, %v548_v23, %v1499_v19 }
 0x119   : > { %v615_v59 = vadd.s32 1, %v927_v33  ;;  %v491_v43 = vand.u32 3, %v1446_v9  ;;  %vm711_vm8 = vcmp.lt.s32.totalorder %v1315_v49, 0  ;;  %v556_v24 = vmul.u32 %v1465_v5, %v540_v8 }
 0x11a   : > { %v784_v37 = vor.u32 %v783_v35, %v782_v39  ;;  %v787_v42 = vshll.u32 %v786_v38, 23  ;;  %v796_v4 = vsel %vm711_vm8, %v795_v15, %v1440_v63  ;;  %v605_v52 = vand.u32 2147483647, %v1417_v50 }
 0x11b   : > { %vm616_vm9 = vcmp.gt.s32.totalorder %v615_v59, 0  ;;  %vm489_vm10 = vweird.f32 %v1274_v6  ;;  %vm558_vm11 = vc.u32 %v1500_v48, %v1486_v30  ;;  %vm1515_vm12 = vcmp.le.f32.partialorder %v709_v60, 0.7853982 }
 0x11c   : > { %v788_v53 = vor.u32 4788187, %v787_v42  ;;  %v791_v1 = vcvt.s32.f32 %v784_v37  ;;  %v617_v9 = vsel %vm616_vm9, %v615_v59, 0  ;;  %v819_v63 = vmul.f32 1.442695, %v1346_v44 }
 0x11d   : > { %v560_v41 = vsel %vm558_vm11, %v559_v47, %v1487_v31  ;;  %v619_v3 = vand.u32 31, %v617_v9  ;;  %vm492_vm13 = vcmp.lt.s32.totalorder %v491_v43, 2  ;;  %vm493_vm14 = vcmp.eq.s32.totalorder %v491_v43, 0 }
 0x11e   : > { %v789_v57 = vand.u32 2147483647, %v788_v53  ;;  %v561_v5 = vadd.s32 %v560_v41, %v556_v24  ;;  %vm496_vm15 = vcmp.eq.s32.totalorder %v491_v43, 2  ;;  %v798_v55 = vsel %vm1515_vm12, 0, %v796_v4 }
 0x11f   : > { %v612_v60 = vand.u32 8388607, %v605_v52  ;;  %v620_v13 = vsub.s32 32, %v619_v3  ;;  %v618_v29 = vshrl.u32 %v617_v9, 5  ;;  %v622_v18 = vshll.u32 %v1122_v62, %v619_v3 }
 0x120   : > { %v792_v12 = vmul.f32 %v791_v1, %v789_v57  ;;  %v562_v45 = vadd.s32 536870912, %v561_v5  ;;  %v625_v39 = vshll.u32 %v1123_v0, %v619_v3  ;;  %v628_v10 = vshll.u32 %v1124_v2, %v619_v3 }
 0x121   : > { %v623_v34 = vshrl.u32 %v1123_v0, %v620_v13  ;;  %v626_v58 = vshrl.u32 %v1124_v2, %v620_v13  ;;  %v629_v21 = vshrl.u32 %v1125_v11, %v620_v13  ;;  %v631_v38 = vshll.u32 %v1125_v11, %v619_v3 }
 0x122   : > { %v1031_v7 = vpop.eup %1030  ;;  %v793_v14 = vxor.u32 2147483648, %v792_v12  ;;  %v1531_v36 = vshrl.u32 %v562_v45, 30  ;;  %v632_v8 = vshrl.u32 %v1126_v17, %v620_v13  ;;  %v634_v42 = vshll.u32 %v1126_v17, %v619_v3 }
 0x123   : > { %v1033_v16 = vpop.eup %1032  ;;  %v497_v44 = vxor.u32 2147483648, %v1031_v7  ;;  %v624_v15 = vor.u32 %v623_v34, %v622_v18  ;;  %v627_v0 = vor.u32 %v626_v58, %v625_v39  ;;  %v630_v2 = vor.u32 %v629_v21, %v628_v10 }
 0x124   : > { %v494_v25 = vxor.u32 2147483648, %v1033_v16  ;;  %v794_v54 = vsel %vm711_vm8, %v793_v14, %v792_v12  ;;  %v564_v35 = vshll.u32 %v1531_v36, 30  ;;  %v633_v37 = vor.u32 %v632_v8, %v631_v38 }
 0x125   : > { %v498_v40 = vsel %vm496_vm15, %v497_v44, %v1033_v16  ;;  %v797_v28 = vsel %vm1515_vm12, %v1315_v49, %v794_v54  ;;  %v635_v19 = vshrl.u32 %v1127_v20, %v620_v13  ;;  %v802_v47 = vadd.s32 3, %v798_v55 }
 0x126   : > { %v495_v27 = vsel %vm493_vm14, %v1031_v7, %v494_v25  ;;  %1034 = vcosq.f32 %v797_v28  ;;  %v1549_v33 = vsub.s32 %v561_v5, %v564_v35  ;;  %v613_v11 = vor.u32 8388608, %v612_v60 }
 0x127   : > { %v499_v31 = vsel %vm492_vm13, %v495_v27, %v498_v40  ;;  %1036 = vsinq.f32 %v797_v28  ;;  %v636_v59 = vor.u32 %v635_v19, %v634_v42  ;;  %vm637_vm0 = vcmp.lt.s32.totalorder %v618_v29, 1 }
 0x128   : > { %v500_v22 = vsel %vm489_vm10, nan, %v499_v31  ;;  %1038 = vpow2.f32 %v819_v63  ;;  %v567_v6 = vsub.s32 0, %v1549_v33  ;;  %vm639_vm1 = vcmp.lt.s32.totalorder %v618_v29, 3 }
 0x129   : > { %v821_v23 = vmul.f32 %v1479_v61, %v500_v22  ;;  %vm640_vm2 = vcmp.lt.s32.totalorder %v618_v29, 4  ;;  %v645_v53 = vsel %vm637_vm0, %v624_v15, %v627_v0  ;;  %v621_v20 = vshrl.u32 %v1122_v62, %v620_v13 }
 0x12a   : > { %v924_v61 = vmin.u32 %v567_v6, %v1549_v33  ;;  %v642_v43 = vsel %vm640_vm2, %v630_v2, 2102212464  ;;  %v646_v17 = vsel %vm640_vm2, %v633_v37, 920167782  ;;  %v649_v24 = vsel %vm637_vm0, %v627_v0, %v630_v2 }
 0x12b   : > { %825 = vst [vmem:[%s1554_s23] sm:$0xff] %v821_v23  ;;  %v647_v4 = vsel %vm639_vm1, %v630_v2, %v646_v17  ;;  %v650_v57 = vsel %vm640_vm2, %v636_v59, 1326507024  ;;  %v803_v1 = vand.u32 3, %v802_v47  ;;  %vm638_vm3 = vcmp.lt.s32.totalorder %v618_v29, 2 }
 0x12c   : > { %v569_v9 = vclz %v924_v61  ;;  %v653_v51 = vshll.u32 %v613_v11, 8  ;;  %v641_v63 = vsel %vm637_vm0, %v621_v20, %v624_v15  ;;  %v643_v41 = vsel %vm639_vm1, %v627_v0, %v642_v43 }
 0x12d   : > { %v648_v3 = vsel %vm638_vm3, %v645_v53, %v647_v4  ;;  %v651_v12 = vsel %vm639_vm1, %v633_v37, %v650_v57  ;;  %v644_v16 = vsel %vm638_vm3, %v641_v63, %v643_v41  ;;  %vm805_vm5 = vcmp.eq.s32.totalorder %v803_v1, 0 }
 0x12e   : > { %v925_v5 = vadd.s32 4294967294, %v569_v9  ;;  %v652_v7 = vsel %vm638_vm3, %v649_v24, %v651_v12  ;;  %v1562_v55 = vmul.u32.u64.low %v653_v51, %v648_v3  ;;  %v1563_v60 = vmul.u32.u64.high %v653_v51, %v648_v3, %v1562_v55 }
 0x12f   : > { %v1565_v62 = vmul.u32.u64.low %v653_v51, %v652_v7  ;;  %v1566_v13 = vmul.u32.u64.high %v653_v51, %v652_v7, %v1565_v62  ;;  %vm808_vm6 = vcmp.eq.s32.totalorder %v803_v1, 2  ;;  %v557_v29 = vadd.s32 %v1486_v30, %v1500_v48 }
 0x130   : > { %vm926_vm4 = vcmp.lt.s32.totalorder %v925_v5, 0  ;;  %v660_v40 = vmul.u32 %v653_v51, %v644_v16  ;;  %v663_v54 = vadd.s32 1, %v1563_v60  ;;  %vm801_vm8 = vweird.f32 %v1315_v49 }
 0x131   : > { %v572_v14 = vsel %vm926_vm4, 0, %v925_v5  ;;  %vm662_vm7 = vc.u32 %v1566_v13, %v1562_v55  ;;  %vm804_vm9 = vcmp.lt.s32.totalorder %v803_v1, 2  ;;  %vm503_vm10 = vcmp.lt.s32.totalorder %v1373_v26, 0 }
 0x132   : > { %v573_v18 = vsub.s32 32, %v572_v14  ;;  %v577_v34 = vsub.s32 4294967266, %v572_v14  ;;  %v574_v27 = vshll.u32 %v1549_v33, %v572_v14  ;;  %v664_v48 = vsel %vm662_vm7, %v663_v54, %v1563_v60 }
 0x133   : > { %v1035_v44 = vpop.eup %1034  ;;  %v665_v22 = vadd.s32 %v664_v48, %v660_v40  ;;  %v587_v6 = vsub.s32 4, %v1531_v36  ;;  %vm502_vm11 = vcmp.le.f32.partialorder %v501_v46, 0.7853982  ;;  %v815_v17 = vmul.f32 1.442695, %v1413_v56 }
 0x134   : > { %v1037_v45 = vpop.eup %1036  ;;  %v809_v25 = vxor.u32 2147483648, %v1035_v44  ;;  %v575_v28 = vshrl.u32 %v557_v29, %v573_v18  ;;  %v578_v39 = vadd.s32 127, %v577_v34  ;;  %v661_v46 = vadd.s32 %v1562_v55, %v1566_v13 }
 0x135   : > { %v806_v58 = vxor.u32 2147483648, %v1037_v45  ;;  %v1039_v10 = vpop.eup %1038  ;;  %v666_v0 = vadd.s32 536870912, %v665_v22  ;;  %v588_v53 = vsel %vm503_vm10, %v587_v6, %v1531_v36  ;;  %vm593_vm0 = vweird.f32 %v1373_v26 }
 0x136   : > { %v810_v21 = vsel %vm808_vm6, %v809_v25, %v1037_v45  ;;  %v576_v35 = vor.u32 %v575_v28, %v574_v27  ;;  %v579_v38 = vshll.u32 %v578_v39, 23  ;;  %v590_v4 = vsel %vm502_vm11, 0, %v588_v53 }
 0x137   : > { %v807_v30 = vsel %vm805_vm5, %v1035_v44, %v806_v58  ;;  %v667_v37 = vshrl.u32 %v666_v0, 30  ;;  %v594_v57 = vadd.s32 3, %v590_v4  ;;  %vm607_vm1 = vcmp.lt.s32.totalorder %v1417_v50, 0 }
 0x138   : > { %v811_v31 = vsel %vm804_vm9, %v807_v30, %v810_v21  ;;  %v580_v23 = vor.u32 4788187, %v579_v38  ;;  %v583_v2 = vcvt.s32.f32 %v576_v35  ;;  %vm606_vm2 = vcmp.le.f32.partialorder %v605_v52, 0.7853982 }
 0x139   : > { %v812_v15 = vsel %vm801_vm8, nan, %v811_v31  ;;  %v668_v19 = vshll.u32 %v667_v37, 30  ;;  %v595_v12 = vand.u32 3, %v594_v57  ;;  %v691_v40 = vsub.s32 4, %v667_v37 }
 0x13a   : > { %v824_v8 = vmul.f32 %v1039_v10, %v812_v15  ;;  %v581_v33 = vand.u32 2147483647, %v580_v23  ;;  %v817_v27 = vmul.f32 1.442695, %v1493_v32  ;;  %vm697_vm6 = vweird.f32 %v1417_v50 }
 0x13b   : > { %v669_v47 = vsub.s32 %v665_v22, %v668_v19  ;;  %vm600_vm13 = vcmp.eq.s32.totalorder %v595_v12, 2  ;;  %vm597_vm14 = vcmp.eq.s32.totalorder %v595_v12, 0  ;;  %vm596_vm15 = vcmp.lt.s32.totalorder %v595_v12, 2 }
 0x13c   : > { %828 = vst [vmem:[%s1554_s23 + $0x18] sm:$0xff] %v824_v8  ;;  %v584_v42 = vmul.f32 %v583_v2, %v581_v33 }
 0x13d   : > { %v671_v59 = vsub.s32 0, %v669_v47 }
 0x13e   : > { %v585_v49 = vxor.u32 2147483648, %v584_v42 }
 0x13f   : > { %v928_v43 = vmin.u32 %v671_v59, %v669_v47 }
 0x140   : > { %v586_v11 = vsel %vm503_vm10, %v585_v49, %v584_v42 }
 0x141   : > { %v589_v61 = vsel %vm502_vm11, %v1373_v26, %v586_v11  ;;  %v673_v20 = vclz %v928_v43  ;;  %v692_v26 = vsel %vm607_vm1, %v691_v40, %v667_v37 }
 0x142   : > { %1040 = vcosq.f32 %v589_v61  ;;  %v694_v28 = vsel %vm606_vm2, 0, %v692_v26 }
 0x143   : > { %1042 = vsinq.f32 %v589_v61  ;;  %v929_v24 = vadd.s32 4294967294, %v673_v20  ;;  %v698_v39 = vadd.s32 3, %v694_v28 }
 0x144   : > { %1044 = vpow2.f32 %v815_v17 }
 0x145   : > { %vm930_vm12 = vcmp.lt.s32.totalorder %v929_v24, 0  ;;  %v699_v10 = vand.u32 3, %v698_v39 }
 0x146   : > { %v676_v1 = vsel %vm930_vm12, 0, %v929_v24 }
 0x147   : > { %v677_v9 = vsub.s32 32, %v676_v1  ;;  %v681_v51 = vsub.s32 4294967266, %v676_v1  ;;  %v678_v63 = vshll.u32 %v669_v47, %v676_v1  ;;  %vm704_vm3 = vcmp.eq.s32.totalorder %v699_v10, 2 }
 0x148   : > { %vm701_vm4 = vcmp.eq.s32.totalorder %v699_v10, 0  ;;  %vm700_vm5 = vcmp.lt.s32.totalorder %v699_v10, 2 }
 0x149   : > { %v679_v41 = vshrl.u32 %v661_v46, %v677_v9  ;;  %v682_v3 = vadd.s32 127, %v681_v51 }
 0x14b   : > { %v680_v5 = vor.u32 %v679_v41, %v678_v63  ;;  %v683_v36 = vshll.u32 %v682_v3, 23 }
 0x14d   : > { %v684_v62 = vor.u32 4788187, %v683_v36  ;;  %v687_v45 = vcvt.s32.f32 %v680_v5 }
 0x14f   : > { %v1041_v7 = vpop.eup %1040  ;;  %v685_v14 = vand.u32 2147483647, %v684_v62 }
 0x150   : > { %v1043_v60 = vpop.eup %1042  ;;  %v601_v56 = vxor.u32 2147483648, %v1041_v7 }
 0x151   : > { %v598_v16 = vxor.u32 2147483648, %v1043_v60  ;;  %v688_v25 = vmul.f32 %v687_v45, %v685_v14  ;;  %v1045_v29 = vpop.eup %1044 }
 0x152   : > { %v602_v44 = vsel %vm600_vm13, %v601_v56, %v1043_v60 }
 0x153   : > { %v599_v55 = vsel %vm597_vm14, %v1041_v7, %v598_v16  ;;  %v689_v58 = vxor.u32 2147483648, %v688_v25 }
 0x154   : > { %v603_v13 = vsel %vm596_vm15, %v599_v55, %v602_v44 }
 0x155   : > { %v604_v18 = vsel %vm593_vm0, nan, %v603_v13  ;;  %v690_v54 = vsel %vm607_vm1, %v689_v58, %v688_v25 }
 0x156   : > { %v822_v34 = vmul.f32 %v1045_v29, %v604_v18  ;;  %v693_v21 = vsel %vm606_vm2, %v1417_v50, %v690_v54 }
 0x157   : > { %1046 = vcosq.f32 %v693_v21 }
 0x158   : > { %826 = vst [vmem:[%s1554_s23 + $0x8] sm:$0xff] %v822_v34  ;;  %1048 = vsinq.f32 %v693_v21 }
 0x159   : > { %1050 = vpow2.f32 %v817_v27 }
 0x164   : > { %v1047_v30 = vpop.eup %1046 }
 0x165   : > { %v1049_v48 = vpop.eup %1048  ;;  %v705_v31 = vxor.u32 2147483648, %v1047_v30 }
 0x166   : > { %v702_v52 = vxor.u32 2147483648, %v1049_v48  ;;  %v1051_v22 = vpop.eup %1050 }
 0x167   : > { %v706_v35 = vsel %vm704_vm3, %v705_v31, %v1049_v48 }
 0x168   : > { %v703_v38 = vsel %vm701_vm4, %v1047_v30, %v702_v52 }
 0x169   : > { %v707_v32 = vsel %vm700_vm5, %v703_v38, %v706_v35 }
 0x16a   : > { %v708_v15 = vsel %vm697_vm6, nan, %v707_v32 }
 0x16b   : > { %v823_v8 = vmul.f32 %v1051_v22, %v708_v15 }
 0x16d   : > { %827 = vst [vmem:[%s1554_s23 + $0x10] sm:$0xff] %v823_v8 }
 0x16e   : > { %1065 = shalt.err (!%p1062_p3)
}
 0x16f   : > { %s1066_s5 = scalar_lea.hbm %s1598_s28, 512  ;;  %s1070_s8 = scalar_lea.hbm %s1647_s2, 1024 }
 0x170   : > { %p1067_p4 = scmp.ne.s32.totalorder %s1598_s28, %s1066_s5  ;;  %p1071_p9 = scmp.lt.s32.totalorder %s1598_s28, %s1647_s2 }
 0x171   : > { %p1072_p10 = scmp.lt.s32.totalorder %s1070_s8, %s1066_s5 }
 0x172   : > { %p1068_p7 = pnand %p1067_p4, %p1184_p5 }
 0x173   : > { %p1073_p11 = por %p1072_p10, %p1071_p9 }
 0x174   : > { %p1069_p8 = pneg %p1068_p7 }
 0x176   : > { %p1074_p12 = pnand %p1073_p11, %p1069_p8 }
 0x178   : > { %1077 = shalt.err (!%p1074_p12)
}
 0x179   : > { %s1129_s17 = smov 128   ;;  %s1130_s21 = smov 8  }
 0x17a   : > { %957 = dma.vmem_to_hbm [thread:$0]  (%p1184_p5), %s1600_s25, 512, %s1598_s28, %s1605_s13, %s1129_s17, %s1129_s17, %s1130_s21  }
 0x17b PF: > { %p963_p13 = scmp.ge.s32.totalorder %s1112_s12, 2  ;;  %s858_s22 = sand.u32 1, %s1100_s9  }
 0x17c   : > { %s859_s23 = scalar_lea.sflag [#allocation3], %s858_s22 }
 0x17d   : > { %p960_p0 = pnand %p963_p13, %p1188_p6 }
 0x17f   : > { %p961_p1 = pneg %p960_p0 }
 0x181   : > { %1095 = dma.done.wait (%p961_p1), %s859_s23, 512  }
 0x182   : > { %1097 = vsyncadd (%p961_p1), %s859_s23, 4294966784  ;;  %p12_p2 = scmp.ge.s32.totalorder %s1171_s15, 4   ;;  %s1654_s9 = smov %s1104_s10 }
 0x183   : > { %s1655_s10 = smov %s1108_s11  ;;  %s1656_s11 = smov %s1182_s18 }
 0x184   : > { %s1657_s12 = smov %s1171_s15  ;;  %14 = sbr.rel (!%p12_p2) target bundleno = 3 (0x3), region = 63 }
 0x189   :  { %864 = vsyncpa [#allocation3], 1 }
 0x18a   :  { %866 = vsyncpa [#allocation3 + $0x1], 1 }

</bundles_post_ra>
